<compile_context>
chip_gen: v5e
topology: v5e:2x2
jax: 0.10.0
libtpu: 0.0.40
codegen_flags: <defaults>
</compile_context>

<pallas_src>
import functools

import jax
import jax.numpy as jnp
from jax import lax
from jax.experimental import pallas as pl
from jax.experimental.pallas import tpu as pltpu


def _round_up(x, m):
    return (x + m - 1) // m * m


def _cdiv(a, b):
    return -(-a // b)


def _vmem_capacity_bytes():
    """Per-core VMEM capacity; conservative 64 MiB (v7x) fallback."""
    try:
        info = pltpu.get_tpu_info()
        cap = getattr(info, "vmem_capacity_bytes", None)
        if cap:
            return int(cap)
    except Exception:
        pass
    return 64 << 20


def mlp_kernel(x_ref, w1_ref, b1_ref, w2_ref, b2_ref, o_ref, acc_ref, *, approx_gelu):
    k = pl.program_id(1)

    @pl.when(k == 0)
    def _init():
        acc_ref[...] = jnp.zeros_like(acc_ref)

    # fc1 on this hidden tile: (tm, d_in) @ (d_in, tk) + b1[tk], f32 accumulation on the MXU.
    x = x_ref[...]
    if x.dtype != w1_ref.dtype:
        x = x.astype(w1_ref.dtype)           # in-register cast (bf16 by default)
    h = jnp.dot(x, w1_ref[...], preferred_element_type=jnp.float32)
    h = h + b1_ref[...].astype(jnp.float32)

    if approx_gelu:
        # tanh-approx GELU: tanh lowers to the EUP slot and overlaps MXU work.
        c = jnp.float32(0.7978845608028654)  # sqrt(2/pi)
        h = 0.5 * h * (1.0 + jnp.tanh(c * (h + 0.044715 * (h * h * h))))
    else:
        # exact erf GELU (bit-parity path with nn.GELU() default)
        h = 0.5 * h * (1.0 + lax.erf(h * jnp.float32(0.7071067811865476)))

    # dropout (eval mode) = identity

    # fc2 partial product over this hidden tile, accumulated in f32 VMEM scratch.
    acc_ref[...] += jnp.dot(h.astype(w2_ref.dtype), w2_ref[...],
                            preferred_element_type=jnp.float32)

    @pl.when(k == pl.num_programs(1) - 1)
    def _finalize():
        # bias b2 added exactly once, after the full hidden reduction.
        o_ref[...] = (acc_ref[...] + b2_ref[...].astype(jnp.float32)).astype(o_ref.dtype)
        # dropout (eval mode) = identity


def prepare_mlp_params(w1, b1, w2, b2, *, tk=512, compute_dtype=jnp.bfloat16):
    """Pad (hidden / out dims) and cast weights ONCE, outside the per-call hot path.

    w1: (d_in, d_hid), w2: (d_hid, d_out)  (PyTorch Linear weights transposed to (in, out)).
    Returns ((w1_p, b1_p, w2_p, b2_p), meta) where meta carries static tiling info.
    """
    d_in, d_hid = w1.shape
    d_hid2, d_out = w2.shape
    assert d_hid2 == d_hid and b1.shape == (d_hid,) and b2.shape == (d_out,)

    # d_out: lane-dense only if needed; d_in is never padded (full-dim blocks are legal).
    d_out_p = d_out if d_out % 128 == 0 else _round_up(d_out, 128)

    # hidden (reduction) tile: multiple of 128, shrunk if weight tiles would blow VMEM.
    d_hid_128 = _round_up(d_hid, 128)
    tk_eff = min(_round_up(max(tk, 128), 128), d_hid_128)
    cap = _vmem_capacity_bytes()
    w_item = jnp.dtype(compute_dtype).itemsize
    while tk_eff > 128 and 2 * (d_in * tk_eff + tk_eff * d_out_p) * w_item > cap // 2:
        tk_eff = _round_up(tk_eff // 2, 128)
    num_k = _cdiv(d_hid_128, tk_eff)
    tk_eff = _round_up(_cdiv(d_hid_128, num_k), 128)   # tighten to bound hidden over-padding
    d_hid_p = num_k * tk_eff

    w1_p = jnp.pad(w1, ((0, 0), (0, d_hid_p - d_hid))).astype(compute_dtype)
    b1_p = jnp.pad(b1, (0, d_hid_p - d_hid)).astype(jnp.float32).reshape(1, d_hid_p)
    w2_p = jnp.pad(w2, ((0, d_hid_p - d_hid), (0, d_out_p - d_out))).astype(compute_dtype)
    b2_p = jnp.pad(b2, (0, d_out_p - d_out)).astype(jnp.float32).reshape(1, d_out_p)

    meta = {"tk": int(tk_eff), "d_out": int(d_out)}
    return (w1_p, b1_p, w2_p, b2_p), meta


def _wspec(shape, index_map, buffers):
    # Optional deeper prefetch on the streamed weight tiles (v5e/v6e, VMEM permitting).
    if buffers and buffers > 2:
        return pl.BlockSpec(shape, index_map, pipeline_mode=pl.Buffered(buffers))
    return pl.BlockSpec(shape, index_map)


@functools.partial(jax.jit,
                   static_argnames=("tk", "d_out", "tm", "approx_gelu", "weight_buffers"))
def _mlp_call(x, w1_p, b1_p, w2_p, b2_p, *, tk, d_out, tm=512, approx_gelu=True,
              weight_buffers=2):
    orig_shape = x.shape
    d_in = orig_shape[-1]
    assert w1_p.shape[0] == d_in
    d_hid_p = w1_p.shape[1]
    d_out_p = w2_p.shape[1]
    assert d_hid_p % tk == 0
    num_k = d_hid_p // tk

    x2d = x.reshape(-1, d_in)
    M = x2d.shape[0]

    x_item = x.dtype.itemsize
    w_item = w1_p.dtype.itemsize

    # ---- derive row tile from a VMEM budget (v7x-safe) ----
    cap = _vmem_capacity_bytes()
    budget = cap * 7 // 10

    def tile_bytes(tm_):
        return (2 * tm_ * d_in * x_item          # x tiles (double-buffered)
                + 2 * d_in * tk * w_item         # w1 tiles
                + 2 * tk * 4                     # b1 tiles (f32)
                + 2 * tk * d_out_p * w_item      # w2 tiles
                + 2 * d_out_p * 4                # b2 tiles (f32)
                + 2 * tm_ * d_out_p * x_item     # out tiles
                + tm_ * d_out_p * 4)             # f32 accumulator scratch

    tm_eff = max(8, _round_up(min(tm, 1024), 8))
    while tm_eff > 64 and tile_bytes(tm_eff) > budget:
        tm_eff = max(64, _round_up(tm_eff // 2, 8))

    # ---- megacore-friendly + tight M padding ----
    if M >= 16 and _cdiv(M, tm_eff) < 2:
        tm_eff = _round_up(_cdiv(M, 2), 8)       # >=2 row blocks so both v7x TCs get work
    num_i = _cdiv(M, tm_eff)
    tm_eff = _round_up(_cdiv(M, num_i), 8)       # bounds over-padding to <8 rows per block
    M_p = num_i * tm_eff

    if M_p != M:
        x2d = jnp.pad(x2d, ((0, M_p - M), (0, 0)))

    grid = (num_i, num_k)

    need = tile_bytes(tm_eff)
    vmem_limit = int(min(cap - (4 << 20), max(need + (4 << 20), 32 << 20)))

    cost = pl.CostEstimate(
        flops=2 * M_p * (d_in * d_hid_p + d_hid_p * d_out_p),
        transcendentals=M_p * d_hid_p,
        bytes_accessed=(M_p * d_in * x_item
                        + num_i * (d_in * d_hid_p * w_item + d_hid_p * 4
                                   + d_hid_p * d_out_p * w_item + d_out_p * 4)
                        + M_p * d_out_p * x_item),
    )

    out = pl.pallas_call(
        functools.partial(mlp_kernel, approx_gelu=approx_gelu),
        out_shape=jax.ShapeDtypeStruct((M_p, d_out_p), x.dtype),
        grid_spec=pltpu.PrefetchScalarGridSpec(
            num_scalar_prefetch=0,
            grid=grid,
            in_specs=[
                pl.BlockSpec((tm_eff, d_in), lambda i, k: (i, 0)),        # x rows (fetched once per i)
                _wspec((d_in, tk), lambda i, k: (0, k), weight_buffers),  # w1 hidden tile
                pl.BlockSpec((1, tk), lambda i, k: (0, k)),               # b1 hidden tile
                _wspec((tk, d_out_p), lambda i, k: (k, 0), weight_buffers),  # w2 hidden tile
                pl.BlockSpec((1, d_out_p), lambda i, k: (0, 0)),          # b2
            ],
            out_specs=pl.BlockSpec((tm_eff, d_out_p), lambda i, k: (i, 0)),
            scratch_shapes=[pltpu.VMEM((tm_eff, d_out_p), jnp.float32)],
        ),
        compiler_params=pltpu.CompilerParams(
            dimension_semantics=("parallel", "arbitrary"),
            vmem_limit_bytes=vmem_limit,
        ),
        cost_estimate=cost,
    )(x2d, w1_p, b1_p, w2_p, b2_p)

    if M_p != M or d_out_p != d_out:
        out = out[:M, :d_out]
    return out.reshape(*orig_shape[:-1], d_out)


def mlp_apply(x, params, meta, *, tm=512, approx_gelu=True, weight_buffers=2):
    """Hot-path entry: weights already prepared (padded/cast once)."""
    w1_p, b1_p, w2_p, b2_p = params
    return _mlp_call(x, w1_p, b1_p, w2_p, b2_p, tk=meta["tk"], d_out=meta["d_out"],
                     tm=tm, approx_gelu=approx_gelu, weight_buffers=weight_buffers)


def mlp_pallas(x, w1, b1, w2, b2, *, tm=512, tk=512, approx_gelu=True,
               compute_dtype=jnp.bfloat16, weight_buffers=2):
    """Convenience wrapper: x: (..., d_in) -> (..., d_out). fc1 + GELU + fc2 fused."""
    params, meta = prepare_mlp_params(w1, b1, w2, b2, tk=tk, compute_dtype=compute_dtype)
    return mlp_apply(x, params, meta, tm=tm, approx_gelu=approx_gelu,
                     weight_buffers=weight_buffers)


def _reference(x, w1, b1, w2, b2):
    h = x @ w1 + b1
    h = 0.5 * h * (1.0 + lax.erf(h / jnp.sqrt(2.0)))
    return h @ w2 + b2


if __name__ == "__main__":
    key = jax.random.PRNGKey(0)

    # ---- Test 1: Mlp(in=32, hidden=64, out=32), eval mode. ----
    batch, seq, d_in, d_hid, d_out = 2, 8, 32, 64, 32
    kx, kw1, kb1, kw2, kb2 = jax.random.split(key, 5)
    x = jax.random.normal(kx, (batch, seq, d_in), dtype=jnp.float32)
    # PyTorch Linear stores (out, in); we store (in, out).
    w1 = jax.random.normal(kw1, (d_in, d_hid), dtype=jnp.float32) * 0.02
    b1 = jax.random.normal(kb1, (d_hid,), dtype=jnp.float32) * 0.02
    w2 = jax.random.normal(kw2, (d_hid, d_out), dtype=jnp.float32) * 0.02
    b2 = jax.random.normal(kb2, (d_out,), dtype=jnp.float32) * 0.02
    ref = _reference(x, w1, b1, w2, b2)

    # f32 / exact-erf path: tight check of kernel structure (padding, reduction, finalize).
    out_f32 = jax.block_until_ready(
        mlp_pallas(x, w1, b1, w2, b2, approx_gelu=False, compute_dtype=jnp.float32))
    assert out_f32.shape == (batch, seq, d_out)
    assert jnp.allclose(out_f32, ref, atol=1e-4, rtol=1e-4), "f32 path mismatch (test 1)"

    # default perf path: bf16 MXU + tanh GELU.
    out_bf16 = jax.block_until_ready(mlp_pallas(x, w1, b1, w2, b2))
    assert out_bf16.shape == (batch, seq, d_out)
    assert jnp.allclose(out_bf16, ref, atol=5e-3, rtol=5e-2), "bf16 path mismatch (test 1)"

    # ---- Test 2: multi-tile hidden reduction, lane-aligned dims, ragged row count. ----
    b2_, s2, di2, dh2, do2 = 3, 25, 128, 384, 128
    k2 = jax.random.PRNGKey(1)
    kx, kw1, kb1, kw2, kb2 = jax.random.split(k2, 5)
    x2 = jax.random.normal(kx, (b2_, s2, di2), dtype=jnp.float32)
    w1_2 = jax.random.normal(kw1, (di2, dh2), dtype=jnp.float32) * 0.02
    b1_2 = jax.random.normal(kb1, (dh2,), dtype=jnp.float32) * 0.02
    w2_2 = jax.random.normal(kw2, (dh2, do2), dtype=jnp.float32) * 0.02
    b2_2 = jax.random.normal(kb2, (do2,), dtype=jnp.float32) * 0.02
    ref2 = _reference(x2, w1_2, b1_2, w2_2, b2_2)

    # tk=128 -> 3 hidden tiles: exercises the k-reduction; f32 strict + bf16 loose.
    out2_f32 = jax.block_until_ready(
        mlp_pallas(x2, w1_2, b1_2, w2_2, b2_2, tk=128, approx_gelu=False,
                   compute_dtype=jnp.float32))
    assert out2_f32.shape == (b2_, s2, do2)
    assert jnp.allclose(out2_f32, ref2, atol=1e-4, rtol=1e-4), "f32 path mismatch (test 2)"

    out2_bf16 = jax.block_until_ready(mlp_pallas(x2, w1_2, b1_2, w2_2, b2_2, tk=128))
    assert out2_bf16.shape == (b2_, s2, do2)
    assert jnp.allclose(out2_bf16, ref2, atol=5e-3, rtol=5e-2), "bf16 path mismatch (test 2)"

    print("KERNEL_OK")
</pallas_src>

<mosaic_0001>
module attributes {stable_mosaic.version = 11 : i64} {
  func.func @mlp_kernel(%arg0: i32, %arg1: i32, %arg2: memref<8x32xf32, #tpu.memory_space<vmem>>, %arg3: memref<32x128xf32, #tpu.memory_space<vmem>>, %arg4: memref<1x128xf32, #tpu.memory_space<vmem>>, %arg5: memref<128x128xf32, #tpu.memory_space<vmem>>, %arg6: memref<1x128xf32, #tpu.memory_space<vmem>>, %arg7: memref<8x128xf32, #tpu.memory_space<vmem>>, %arg8: memref<8x128xf32, #tpu.memory_space<vmem>>) attributes {dimension_semantics = [#tpu.dimension_semantics<parallel>, #tpu.dimension_semantics<arbitrary>], iteration_bounds = array<i64: 2, 1>, scalar_prefetch = 0 : i64, scratch_operands = 1 : i64, tpu.core_type = #tpu.core_type<tc>, window_params = [{transform_indices = @transform_0, window_bounds = array<i64: 8, 32>}, {transform_indices = @transform_1, window_bounds = array<i64: 32, 128>}, {transform_indices = @transform_2, window_bounds = array<i64: 1, 128>}, {transform_indices = @transform_3, window_bounds = array<i64: 128, 128>}, {pipeline_mode = #tpu.pipeline_mode<synchronous>, transform_indices = @transform_4, window_bounds = array<i64: 1, 128>}, {transform_indices = @transform_5, window_bounds = array<i64: 8, 128>}]} {
    %c0_i32 = arith.constant 0 : i32
    %0 = arith.cmpi eq, %arg1, %c0_i32 : i32
    %1 = arith.extui %0 : i1 to i32
    %c0_i32_0 = arith.constant 0 : i32
    %2 = arith.cmpi ne, %1, %c0_i32_0 : i32
    scf.if %2 {
      %cst_18 = arith.constant 0.000000e+00 : f32
      %25 = vector.broadcast %cst_18 : f32 to vector<8x128xf32>
      %c0_19 = arith.constant 0 : index
      %c0_20 = arith.constant 0 : index
      %26 = vector.load %arg8[%c0_19, %c0_20] : memref<8x128xf32, #tpu.memory_space<vmem>>, vector<8x128xf32>
      tpu.vector_store %arg8[%c0_19, %c0_20], %25 {strides = array<i32>} : memref<8x128xf32, #tpu.memory_space<vmem>>, vector<8x128xf32>,
    } else {
    }
    %c0 = arith.constant 0 : index
    %c0_1 = arith.constant 0 : index
    %3 = vector.load %arg2[%c0, %c0_1] : memref<8x32xf32, #tpu.memory_space<vmem>>, vector<8x32xf32>
    %c0_2 = arith.constant 0 : index
    %c0_3 = arith.constant 0 : index
    %4 = vector.load %arg3[%c0_2, %c0_3] : memref<32x128xf32, #tpu.memory_space<vmem>>, vector<32x128xf32>
    %cst = arith.constant dense<0.000000e+00> : vector<8x128xf32>
    %5 = tpu.matmul %3, %4, %cst {dimension_numbers = #tpu.dot_dimension_numbers<[1], [0], [0], [1], [0, 0, 1, 1], [], []>} : vector<8x32xf32>, vector<32x128xf32>, vector<8x128xf32> -> vector<8x128xf32>
    %c0_4 = arith.constant 0 : index
    %c0_5 = arith.constant 0 : index
    %6 = vector.load %arg4[%c0_4, %c0_5] : memref<1x128xf32, #tpu.memory_space<vmem>>, vector<1x128xf32>
    %7 = vector.broadcast %6 : vector<1x128xf32> to vector<8x128xf32>
    %8 = arith.addf %5, %7 : vector<8x128xf32>
    %cst_6 = arith.constant 5.000000e-01 : f32
    %9 = vector.broadcast %cst_6 : f32 to vector<8x128xf32>
    %10 = arith.mulf %9, %8 : vector<8x128xf32>
    %cst_7 = arith.constant 0.707106769 : f32
    %11 = vector.broadcast %cst_7 : f32 to vector<8x128xf32>
    %12 = arith.mulf %8, %11 : vector<8x128xf32>
    %13 = math.erf %12 : vector<8x128xf32>
    %cst_8 = arith.constant 1.000000e+00 : f32
    %14 = vector.broadcast %cst_8 : f32 to vector<8x128xf32>
    %15 = arith.addf %14, %13 : vector<8x128xf32>
    %16 = arith.mulf %10, %15 : vector<8x128xf32>
    %c0_9 = arith.constant 0 : index
    %c0_10 = arith.constant 0 : index
    %17 = vector.load %arg8[%c0_9, %c0_10] : memref<8x128xf32, #tpu.memory_space<vmem>>, vector<8x128xf32>
    %c0_11 = arith.constant 0 : index
    %c0_12 = arith.constant 0 : index
    %18 = vector.load %arg5[%c0_11, %c0_12] : memref<128x128xf32, #tpu.memory_space<vmem>>, vector<128x128xf32>
    %cst_13 = arith.constant dense<0.000000e+00> : vector<8x128xf32>
    %19 = tpu.matmul %16, %18, %cst_13 {dimension_numbers = #tpu.dot_dimension_numbers<[1], [0], [0], [1], [0, 0, 1, 1], [], []>} : vector<8x128xf32>, vector<128x128xf32>, vector<8x128xf32> -> vector<8x128xf32>
    %20 = arith.addf %17, %19 : vector<8x128xf32>
    %c0_14 = arith.constant 0 : index
    %c0_15 = arith.constant 0 : index
    %21 = vector.load %arg8[%c0_14, %c0_15] : memref<8x128xf32, #tpu.memory_space<vmem>>, vector<8x128xf32>
    tpu.vector_store %arg8[%c0_14, %c0_15], %20 {strides = array<i32>} : memref<8x128xf32, #tpu.memory_space<vmem>>, vector<8x128xf32>,
    %c0_i32_16 = arith.constant 0 : i32
    %22 = arith.cmpi eq, %arg1, %c0_i32_16 : i32
    %23 = arith.extui %22 : i1 to i32
    %c0_i32_17 = arith.constant 0 : i32
    %24 = arith.cmpi ne, %23, %c0_i32_17 : i32
    scf.if %24 {
      %c0_18 = arith.constant 0 : index
      %c0_19 = arith.constant 0 : index
      %25 = vector.load %arg8[%c0_18, %c0_19] : memref<8x128xf32, #tpu.memory_space<vmem>>, vector<8x128xf32>
      %c0_20 = arith.constant 0 : index
      %c0_21 = arith.constant 0 : index
      %26 = vector.load %arg6[%c0_20, %c0_21] : memref<1x128xf32, #tpu.memory_space<vmem>>, vector<1x128xf32>
      %27 = vector.broadcast %26 : vector<1x128xf32> to vector<8x128xf32>
      %28 = arith.addf %25, %27 : vector<8x128xf32>
      %c0_22 = arith.constant 0 : index
      %c0_23 = arith.constant 0 : index
      %29 = vector.load %arg7[%c0_22, %c0_23] : memref<8x128xf32, #tpu.memory_space<vmem>>, vector<8x128xf32>
      tpu.vector_store %arg7[%c0_22, %c0_23], %28 {strides = array<i32>} : memref<8x128xf32, #tpu.memory_space<vmem>>, vector<8x128xf32>,
    } else {
    }
    return
  }
  func.func @transform_0(%arg0: i32, %arg1: i32) -> (i32, i32) {
    %c0_i32 = arith.constant 0 : i32
    %c0_i32_0 = arith.constant 0 : i32
    return %arg0, %c0_i32 : i32, i32
  }
  func.func @transform_1(%arg0: i32, %arg1: i32) -> (i32, i32) {
    %c0_i32 = arith.constant 0 : i32
    %c0_i32_0 = arith.constant 0 : i32
    return %c0_i32, %arg1 : i32, i32
  }
  func.func @transform_2(%arg0: i32, %arg1: i32) -> (i32, i32) {
    %c0_i32 = arith.constant 0 : i32
    %c0_i32_0 = arith.constant 0 : i32
    return %c0_i32, %arg1 : i32, i32
  }
  func.func @transform_3(%arg0: i32, %arg1: i32) -> (i32, i32) {
    %c0_i32 = arith.constant 0 : i32
    %c0_i32_0 = arith.constant 0 : i32
    return %arg1, %c0_i32 : i32, i32
  }
  func.func @transform_4(%arg0: i32, %arg1: i32) -> (i32, i32) {
    %c0_i32 = arith.constant 0 : i32
    %c0_i32_0 = arith.constant 0 : i32
    %c0_i32_1 = arith.constant 0 : i32
    return %c0_i32, %c0_i32_0 : i32, i32
  }
  func.func @transform_5(%arg0: i32, %arg1: i32) -> (i32, i32) {
    %c0_i32 = arith.constant 0 : i32
    %c0_i32_0 = arith.constant 0 : i32
    return %arg0, %c0_i32 : i32, i32
  }
}

</mosaic_0001>

<bundles_post_ra>
// kernel: _mlp_call.1
= control target key start
LH: loop header
LB: loop body
LE: loop exit
PB: predicated region body
PF: predicated region fallthrough
CT: control target
= control target key end

     0   :  { %10 = vsyncpa [#allocation4], 0  ;;  %s959_s0 = inlined_call_operand.hbm [shape: f32[16,32], index: 0, kind: input, shape index: {}]   ;;  %s960_s1 = inlined_call_operand.hbm [shape: f32[32,128], index: 1, kind: input, shape index: {}]   ;;  %s961_s2 = inlined_call_operand.vmem [shape: f32[1,128], index: 2, kind: input, shape index: {}]   ;;  %s962_s3 = inlined_call_operand.hbm [shape: f32[128,128], index: 3, kind: input, shape index: {}]   ;;  %s963_s4 = inlined_call_operand.vmem [shape: f32[1,128], index: 4, kind: input, shape index: {}]   ;;  %s964_s5 = inlined_call_operand.vmem [shape: f32[16,128], index: 5, kind: output, shape index: {}]  }
   0x1   :  { %12 = vsyncpa [#allocation4 + $0x1], 0 }
   0x2   :  { %13 = vsyncpa [#allocation6], 0  ;;  %s836_s18 = smov 0   ;;  %s838_s19 = smov 0  }
   0x3   :  { %s840_s20 = smov 0   ;;  %s842_s21 = smov 0  }
   0x4   :  { %s844_s22 = smov 0   ;;  %s846_s23 = smov 0  }
   0x5 LB: > { %s556_s24 = sadd.s32 4294967295, %s800_s23   ;;  %p558_p0 = scmp.ge.s32.totalorder %s800_s23, 1  ;;  %s800_s23 = sphi %s846_s23, %s19_s23   ;;  %s796_s22 = sphi %s844_s22, %s973_s22   ;;  %s792_s21 = sphi %s842_s21, %s972_s21   ;;  %s788_s20 = sphi %s840_s20, %s971_s20   ;;  %s784_s19 = sphi %s838_s19, %s970_s19   ;;  %s780_s18 = sphi %s836_s18, %s969_s18  }
   0x6   : > { %p868_p1 = scmp.eq.s32.totalorder %s556_s24, 0  ;;  %p187_p2 = scmp.lt.s32.totalorder %s800_s23, 3 }
   0x7   : > { %s200_s28 = sshll.u32 %s960_s1, 4  ;;  %s802_s30 = smov [#allocation5]   ;;  %s201_s28 = int_to_ptr.hbm [resolvable:$true] %s200_s28 }
   0x8   : > { %p876_p3 = pnand %p558_p0, %p187_p2  ;;  %s202_s6 = sshll.u32 %s802_s30, 4  ;;  %s203_s6 = int_to_ptr.vmem [resolvable:$true] %s202_s6 }
   0x9   : > { %s223_s9 = sshll.u32 %s962_s3, 4  ;;  %s803_s10 = smov 128   ;;  %s224_s9 = int_to_ptr.hbm [resolvable:$true] %s223_s9 }
   0xa   : > { %p584_p4 = pneg %p876_p3  ;;  %s804_s11 = smov 8  }
   0xb   : > { %s805_s12 = smov [#allocation7]   ;;  %s31_s14 = sadd.s32 1, %s796_s22 }
   0xc   : > { %p585_p5 = pnand %p584_p4, %p868_p1  ;;  %s225_s13 = sshll.u32 %s805_s12, 4  ;;  %s226_s13 = int_to_ptr.vmem [resolvable:$true] %s225_s13 }
   0xd   : > { %s38_s15 = sadd.s32 1, %s788_s20  ;;  %p33_p6 = scmp.ge.s32.totalorder %s31_s14, 2 }
   0xe   : > { %587 = dma.hbm_to_vmem [thread:$0]  (!%p585_p5), %s201_s28, 512, %s203_s6, [#allocation6], %s803_s10, %s803_s10, %s804_s11  }
   0xf   : > { %590 = dma.hbm_to_vmem [thread:$0]  (!%p585_p5), %s224_s9, 2048, %s226_s13, [#allocation6], %s803_s10, %s803_s10, %s804_s11  }
  0x10   : > { %p45_p7 = scmp.ne.s32.totalorder %s788_s20, %s784_s19  ;;  %p46_p8 = scmp.eq.s32.totalorder %s800_s23, 0 }
  0x11   : > { %p51_p9 = scmp.ne.s32.totalorder %s784_s19, %s780_s18  ;;  %s975_s14 = smov (%p33_p6, %s31_s14), 0 }
  0x12   : > { %p896_p10 = por %p46_p8, %p45_p7  ;;  %s35_s24 = ssub.s32 %s796_s22, %s975_s14 }
  0x13   : > { %p902_p11 = por %p868_p1, %p51_p9  ;;  %p597_p12 = scmp.lt.s32.totalorder %s800_s23, 2 }
  0x14   : > { %p36_p13 = scmp.eq.s32.totalorder %s35_s24, 0  ;;  %s242_s26 = sand.u32 1, %s788_s20  }
  0x15   : > { %s563_s27 = sshll.u32 %s242_s26, 3  ;;  %s564_s18 = sshll.u32 %s796_s22, 3 }
  0x16   : > { %s911_s28 = scalar_select %p36_p13, %s788_s20, %s38_s15  }
  0x17   : > { %s250_s7 = scalar_lea.hbm %s959_s0, %s564_s18  ;;  %s246_s8 = scalar_lea.vmem [#allocation3], %s563_s27 }
  0x18   : > { %s254_s9 = sshll.u32 %s246_s8, 4  ;;  %s252_s10 = sshll.u32 %s250_s7, 4  ;;  %s255_s9 = int_to_ptr.vmem [resolvable:$true] %s254_s9  ;;  %s253_s10 = int_to_ptr.hbm [resolvable:$true] %s252_s10 }
  0x19   : > { %p592_p0 = pnand %p597_p12, %p896_p10  ;;  %s243_s11 = scalar_lea.sflag [#allocation4], %s242_s26 }
  0x1a   : > { %263 = sbr.rel (%p876_p3) target bundleno = 350 (0x15e), region = 40  ;;  %s265_s12 = sand.u32 (!%p876_p3), 1, %s784_s19  }
  0x1b   : > { %594 = dma.hbm_to_vmem [thread:$0]  (!%p592_p0), %s253_s10, 128, %s255_s9, %s243_s11  }
  0x1c   : > { %s566_s13 = sshll.u32 (!%p876_p3), %s265_s12, 3  ;;  %s266_s15 = scalar_lea.sflag (!%p876_p3), [#allocation4], %s265_s12 }
  0x1d   : > { %s269_s24 = scalar_lea.vmem (!%p876_p3), [#allocation3], %s566_s13 }
  0x1f   : > { %771 = dma.done.wait (%p902_p11), %s266_s15, 128  }
  0x20   : > { %773 = vsyncadd (%p902_p11), %s266_s15, 4294967168 }
  0x21   : > { %775 = dma.done.wait (%p868_p1), [#allocation6], 2560  }
  0x22   : > { %777 = vsyncadd (%p868_p1), [#allocation6], 4294964736  ;;  %v326_v0 = vld [vmem:[#allocation5 + $0x18] sm:$0xff]  ;;  %v325_v1 = vld [vmem:[#allocation5 + $0x10] sm:$0xff]  ;;  %vm331_vm0 = vcmask 261120   ;;  %p313_p1 = scmp.lt.s32.totalorder %s792_s21, 1 }
  0x23   : > { %347 = vmatpush.msra.mxu0 %v326_v0  ;;  %v324_v2 = vld [vmem:[#allocation5 + $0x8] sm:$0xff]  ;;  %v323_v3 = vld [vmem:[#allocation5] sm:$0xff]  ;;  %v322_v4 = vld [vmem:[%s269_s24] sm:$0xff] }
  0x24   : > { %v415_v5 = vld [vmem:[#allocation7 + $0x78] sm:$0xff]  ;;  %v414_v6 = vld [vmem:[#allocation7 + $0x70] sm:$0xff]  ;;  %v413_v7 = vld [vmem:[#allocation7 + $0x68] sm:$0xff]  ;;  %s977_s21 = smov (!%p313_p1, %s792_s21), 1 }
  0x25   : > { %348 = vmatpush.msra.mxu0 %v325_v1  ;;  %416 = vmatpush.msra.mxu1 %v415_v5  ;;  %v412_v8 = vld [vmem:[#allocation7 + $0x60] sm:$0xff]  ;;  %v652_v9 = vld [vmem:[%s961_s2] ss:$0 sm:$0xff]  ;;  %v411_v10 = vld [vmem:[#allocation7 + $0x58] sm:$0xff]  ;;  %s569_s16 = sshll.u32 %s977_s21, 3 }
  0x26   : > { %v410_v11 = vld [vmem:[#allocation7 + $0x50] sm:$0xff]  ;;  %v409_v13 = vld [vmem:[#allocation7 + $0x48] sm:$0xff]  ;;  %v408_v15 = vld [vmem:[#allocation7 + $0x40] sm:$0xff]  ;;  %s316_s30 = scalar_lea.vmem %s964_s5, %s569_s16 }
  0x27   : > { %349 = vmatpush.msra.mxu0 %v324_v2  ;;  %417 = vmatpush.msra.mxu1 %v414_v6  ;;  %v407_v17 = vld [vmem:[#allocation7 + $0x38] sm:$0xff]  ;;  %v406_v19 = vld [vmem:[#allocation7 + $0x30] sm:$0xff]  ;;  %v405_v21 = vld [vmem:[#allocation7 + $0x28] sm:$0xff] }
  0x28   : > { %v404_v24 = vld [vmem:[#allocation7 + $0x20] sm:$0xff]  ;;  %v403_v27 = vld [vmem:[#allocation7 + $0x18] sm:$0xff]  ;;  %v402_v30 = vld [vmem:[#allocation7 + $0x10] sm:$0xff] }
  0x29   : > { %350 = vmatpush.msra.mxu0 %v323_v3  ;;  %418 = vmatpush.msra.mxu1 %v413_v7  ;;  %v401_v33 = vld [vmem:[#allocation7 + $0x8] sm:$0xff]  ;;  %v400_v35 = vld [vmem:[#allocation7] sm:$0xff]  ;;  %v653_v63 = vld [vmem:[%s963_s4] ss:$0 sm:$0xff] }
  0x2a   : > { %570 = vmatmul.msk.f32.vlgmr.msra.gmra.mxu0 %vm331_vm0, %v322_v4 }
  0x2b   : > { %419 = vmatpush.msra.mxu1 %v412_v8 }
  0x2d   : > { %420 = vmatpush.msra.mxu1 %v411_v10 }
  0x2f   : > { %421 = vmatpush.msra.mxu1 %v410_v11 }
  0x31   : > { %422 = vmatpush.msra.mxu1 %v409_v13 }
  0x33   : > { %423 = vmatpush.msra.mxu1 %v408_v15 }
  0x35   : > { %424 = vmatpush.msra.mxu1 %v407_v17 }
  0x37   : > { %425 = vmatpush.msra.mxu1 %v406_v19 }
  0x39   : > { %426 = vmatpush.msra.mxu1 %v405_v21 }
  0x3b   : > { %427 = vmatpush.msra.mxu1 %v404_v24 }
  0x3d   : > { %428 = vmatpush.msra.mxu1 %v403_v27 }
  0x3f   : > { %429 = vmatpush.msra.mxu1 %v402_v30 }
  0x41   : > { %430 = vmatpush.msra.mxu1 %v401_v33 }
  0x43   : > { %431 = vmatpush.msra.mxu1 %v400_v35 }
  0xa7   : > { %v352_v12 = vpop.f32.mrf.mxu0 }
  0xa8   : > { %v353_v14 = vadd.f32 %v652_v9, %v352_v12 }
  0xaa   : > { %v356_v16 = vmul.f32 0.70710677, %v353_v14  ;;  %v355_v60 = vmul.f32 0.5, %v353_v14 }
  0xac   : > { %v357_v18 = vmul.f32 %v356_v16, %v356_v16 }
  0xae   : > { %v358_v20 = vmin.f32 %v357_v18, 16.0 }
  0xb0   : > { %v359_v22 = vmul.f32 2.1237322e-06, %v358_v20  ;;  %v370_v23 = vmul.f32 3.8918573e-05, %v358_v20 }
  0xb2   : > { %v360_v25 = vadd.f32 0.00028619796, %v359_v22  ;;  %v371_v26 = vadd.f32 0.001143296, %v370_v23 }
  0xb4   : > { %v361_v28 = vmul.f32 %v360_v25, %v358_v20  ;;  %v372_v29 = vmul.f32 %v371_v26, %v358_v20 }
  0xb6   : > { %v373_v31 = vadd.f32 0.014752088, %v372_v29  ;;  %v362_v32 = vadd.f32 0.0036580483, %v361_v28 }
  0xb8   : > { %v374_v34 = vmul.f32 %v373_v31, %v358_v20  ;;  %v363_v37 = vmul.f32 %v362_v32, %v358_v20 }
  0xba   : > { %v375_v36 = vadd.f32 0.112945676, %v374_v34  ;;  %v364_v40 = vadd.f32 0.05243302, %v363_v37 }
  0xbc   : > { %v376_v38 = vmul.f32 %v375_v36, %v358_v20  ;;  %v365_v43 = vmul.f32 %v364_v40, %v358_v20 }
  0xbe   : > { %v377_v39 = vadd.f32 0.4994258, %v376_v38  ;;  %v366_v44 = vadd.f32 0.18741608, %v365_v43 }
  0xc0   : > { %v378_v41 = vmul.f32 %v377_v39, %v358_v20  ;;  %v367_v46 = vmul.f32 %v366_v44, %v358_v20 }
  0xc2   : > { %v379_v42 = vadd.f32 1.0, %v378_v41  ;;  %v368_v50 = vadd.f32 1.1283791, %v367_v46 }
  0xc4   : > { %654 = vrcp.f32 %v379_v42  ;;  %v391_v49 = vand.u32 2147483648, %v379_v42  ;;  %v389_v52 = vand.u32 2147483647, %v379_v42  ;;  %vm385_vm2 = vweird.f32 %v379_v42 }
  0xc5   : > { %v369_v55 = vmul.f32 %v368_v50, %v356_v16 }
  0xc6   : > { %v392_v54 = vor.u32 1.1754944e-38, %v391_v49  ;;  %vm390_vm4 = vcmp.eq.f32.partialorder %v389_v52, 8.507059e+37 }
  0xca   : > { %v655_v45 = vpop.eup %654 }
  0xcb   : > { %v381_v47 = vmul.f32 %v655_v45, %v379_v42  ;;  %vm386_vm1 = vweird.f32 %v655_v45 }
  0xcc   : > { %vm387_vm3 = vmor %vm385_vm2, %vm386_vm1 }
  0xcd   : > { %v382_v48 = vsub.f32 1.0, %v381_v47 }
  0xcf   : > { %v383_v51 = vmul.f32 %v655_v45, %v382_v48 }
  0xd1   : > { %v384_v53 = vadd.f32 %v655_v45, %v383_v51 }
  0xd3   : > { %v388_v56 = vsel %vm387_vm3, %v655_v45, %v384_v53 }
  0xd4   : > { %v393_v57 = vsel %vm390_vm4, %v392_v54, %v388_v56 }
  0xd5   : > { %v394_v58 = vmul.f32 %v393_v57, %v369_v55 }
  0xd7   : > { %v571_v59 = vclamps-f32 %v394_v58, 1.0 }
  0xd9   : > { %v397_v61 = vadd.f32 1.0, %v571_v59 }
  0xdb   : > { %v398_v62 = vmul.f32 %v397_v61, %v355_v60 }
  0xdd   : > { %432 = vmatmul.f32.vlgmr.msra.gmra.mxu1 %v398_v62 }
 0x15a   : > { %v433_v0 = vpop.f32.mrf.mxu1 }
 0x15b   : > { %v446_v1 = vadd.f32 %v653_v63, %v433_v0 }
 0x15d   : > { %447 = vst [vmem:[%s316_s30] sm:$0xff] %v446_v1 }
 0x15e PF: > { %s19_s23 = sadd.s32 1, %s800_s23   ;;  %s969_s18 = smov %s784_s19 }
 0x15f   : > { %p16_p2 = scmp.ge.s32.totalorder %s19_s23, 4   ;;  %s970_s19 = smov %s788_s20 }
 0x160   : > { %s971_s20 = smov %s911_s28  ;;  %s972_s21 = smov %s796_s22 }
 0x161   : > { %s973_s22 = smov %s975_s14  ;;  %18 = sbr.rel (!%p16_p2) target bundleno = 5 (0x5), region = 101 }
 0x166   :  { %467 = vsyncpa [#allocation4], 1 }
 0x167   :  { %469 = vsyncpa [#allocation4 + $0x1], 1 }
 0x168   :  { %470 = vsyncpa [#allocation6], 1 }

</bundles_post_ra>
